<compile_context>
chip_gen: v5e
topology: v5e:2x2
jax: 0.10.0
libtpu: 0.0.40
codegen_flags: <defaults>
</compile_context>

<pallas_src>
import functools

import jax
import jax.numpy as jnp
from jax import lax
from jax.experimental import pallas as pl
from jax.experimental.pallas import tpu as pltpu


def _round_up(n, m):
    return ((n + m - 1) // m) * m


def self_attn_kernel(x_ref, wq_ref, wkv_ref, o_ref, kv_ref, *,
                     d_pad, tq, s_actual, s_pad):
    """One (batch b, query-tile qt) grid step.

    x_ref   : (1, S_pad, Dp)  bf16  full padded sequence for batch b
    wq_ref  : (Dp, Dp)        bf16  W_q, pre-scaled by 1/sqrt(D)
    wkv_ref : (2*Dp, Dp)      bf16  fused [W_k; W_v]
    o_ref   : (1, TQ, Dp)           attention output tile
    kv_ref  : (S_pad, 2*Dp)   bf16  persistent per-batch K/V scratch
    """
    qt = pl.program_id(1)
    # Contract last dims of both operands (x @ W.T / q @ k.T): native MXU
    # transposed-RHS contraction, no XLU transpose.
    dn_t = (((1,), (1,)), ((), ()))

    # --- Hoisted K/V projection: once per batch element (qt == 0). ---------
    # The qt grid axis is "arbitrary" (sequential), so this runs before every
    # other query tile of the same batch element; scratch persists across qt.
    @pl.when(qt == 0)
    def _():
        kv_f32 = lax.dot_general(x_ref[0], wkv_ref[...], dn_t,
                                 preferred_element_type=jnp.float32)
        kv_ref[...] = kv_f32.astype(jnp.bfloat16)          # (S_pad, 2*Dp)

    # --- Query tile: slice from the already-resident full-sequence block. --
    row0 = pl.multiple_of(qt * tq, tq)
    xq = x_ref[0, pl.ds(row0, tq), :]                      # (TQ, Dp) bf16
    q = lax.dot_general(xq, wq_ref[...], dn_t,
                        preferred_element_type=jnp.float32).astype(jnp.bfloat16)

    k = kv_ref[:, :d_pad]                                  # (S_pad, Dp) bf16
    v = kv_ref[:, d_pad:]                                  # (S_pad, Dp) bf16

    # Attention scores (scale already folded into W_q); f32 for the softmax.
    scores = lax.dot_general(q, k, dn_t,
                             preferred_element_type=jnp.float32)  # (TQ, S_pad)

    if s_pad > s_actual:  # static: mask padded keys out of the softmax
        key_idx = lax.broadcasted_iota(jnp.int32, scores.shape, 1)
        scores = jnp.where(key_idx < s_actual, scores, jnp.float32(-1e30))

    # Numerically stable softmax; normalize AFTER the PV matmul so the
    # reciprocal-multiply touches (TQ, Dp) elements instead of (TQ, S_pad).
    m = jnp.max(scores, axis=-1, keepdims=True)
    p = jnp.exp(scores - m)
    denom = jnp.sum(p, axis=-1, keepdims=True)

    out = jnp.dot(p.astype(jnp.bfloat16), v,
                  preferred_element_type=jnp.float32)      # (TQ, Dp) f32
    out = out * pl.reciprocal(denom, approx=True)          # EUP slot
    o_ref[0] = out.astype(o_ref.dtype)


def _tpu_tile_and_vmem():
    """Generation-aware query-tile target and physical VMEM capacity."""
    try:
        kind = jax.devices()[0].device_kind.lower()
    except Exception:
        kind = ""
    # 256-wide MXU on v6e/v7x -> 256 query tile; 128-wide MXU (v5e & older) -> 128.
    tq_target = 256 if ("v6" in kind or "v7" in kind) else 128
    try:
        vmem_cap = int(pltpu.get_tpu_info().vmem_capacity_bytes)
    except Exception:
        vmem_cap = 64 * 1024 * 1024  # conservative (v7x per-core VMEM)
    return tq_target, vmem_cap


def self_attention(x, wq, wk, wv):
    """x: (B, S, D); wq/wk/wv: (D, D) in nn.Linear layout (out, in)."""
    B, S, D = x.shape
    out_dtype = x.dtype
    scale = 1.0 / (D ** 0.5)

    tq_target, vmem_cap = _tpu_tile_and_vmem()

    # Feature dim padded to a multiple of 128 -> lane-dense blocks and stores.
    d_pad = _round_up(D, 128)
    # Sequence padded to a multiple of the query tile; padded keys are masked
    # inside the kernel, padded query rows are sliced off afterwards.
    tq = tq_target if S >= tq_target else _round_up(S, 8)
    s_pad = _round_up(S, tq)
    nq = s_pad // tq

    x_b = jnp.pad(x, ((0, 0), (0, s_pad - S), (0, d_pad - D))).astype(jnp.bfloat16)
    wq_b = jnp.pad(wq * scale, ((0, d_pad - D), (0, d_pad - D))).astype(jnp.bfloat16)
    wkv_b = jnp.concatenate(
        [jnp.pad(wk, ((0, d_pad - D), (0, d_pad - D))),
         jnp.pad(wv, ((0, d_pad - D), (0, d_pad - D)))],
        axis=0).astype(jnp.bfloat16)                       # (2*Dp, Dp)

    # Working-set estimate -> generation-aware VMEM limit (cap at ~85% phys).
    out_bytes = jnp.dtype(out_dtype).itemsize
    working = (2 * s_pad * d_pad * 2                # x block, double-buffered
               + 2 * 3 * d_pad * d_pad * 2          # Wq + [Wk;Wv] (worst case x2)
               + s_pad * 2 * d_pad * 2              # bf16 K/V scratch
               + s_pad * 2 * d_pad * 4              # transient f32 kv (qt == 0)
               + 2 * tq * d_pad * out_bytes         # out block, double-buffered
               + 3 * tq * s_pad * 4                 # f32 scores / probs
               + 4 * tq * d_pad * 4)                # q / out temporaries
    vmem_limit = max(16 << 20, min(int(working * 1.5) + (4 << 20),
                                   int(vmem_cap * 0.85)))

    kernel = functools.partial(self_attn_kernel, d_pad=d_pad, tq=tq,
                               s_actual=S, s_pad=s_pad)

    def run(single_buffer_weights):
        if single_buffer_weights:
            # Constant block index -> single VMEM copy (no pipelining benefit).
            wspec = lambda shape: pl.BlockSpec(shape, lambda b, qt: (0, 0),
                                               pipeline_mode=pl.Buffered(1))
        else:
            wspec = lambda shape: pl.BlockSpec(shape, lambda b, qt: (0, 0))
        out = pl.pallas_call(
            kernel,
            out_shape=jax.ShapeDtypeStruct((B, s_pad, d_pad), out_dtype),
            grid_spec=pltpu.PrefetchScalarGridSpec(
                num_scalar_prefetch=0,
                grid=(B, nq),
                in_specs=[
                    pl.BlockSpec((1, s_pad, d_pad), lambda b, qt: (b, 0, 0)),
                    wspec((d_pad, d_pad)),
                    wspec((2 * d_pad, d_pad)),
                ],
                out_specs=pl.BlockSpec((1, tq, d_pad), lambda b, qt: (b, qt, 0)),
                scratch_shapes=[pltpu.VMEM((s_pad, 2 * d_pad), jnp.bfloat16)],
            ),
            compiler_params=pltpu.CompilerParams(
                # B carries megacore parallelism (v7x); qt must stay sequential
                # so the per-batch K/V scratch written at qt == 0 is valid.
                dimension_semantics=("parallel", "arbitrary"),
                vmem_limit_bytes=vmem_limit,
            ),
        )(x_b, wq_b, wkv_b)
        return jax.block_until_ready(out)

    try:
        out_padded = run(single_buffer_weights=True)
    except Exception:
        # Fallback if this JAX build rejects single-buffered weight specs.
        out_padded = run(single_buffer_weights=False)

    return out_padded[:, :S, :D]


def self_attention_ref(x, wq, wk, wv):
    """Pure-JAX f32 reference matching the PyTorch forward exactly."""
    D = x.shape[-1]
    q = jnp.einsum("bsd,ed->bse", x, wq)
    k = jnp.einsum("bsd,ed->bse", x, wk)
    v = jnp.einsum("bsd,ed->bse", x, wv)
    scores = jnp.einsum("bqd,bkd->bqk", q, k) / (D ** 0.5)
    w = jax.nn.softmax(scores, axis=-1)
    return jnp.einsum("bqk,bkd->bqd", w, v)


if __name__ == "__main__":
    key = jax.random.PRNGKey(0)

    def make_case(b, s, d, k):
        kx, kq, kk, kv = jax.random.split(k, 4)
        bound = 1.0 / (d ** 0.5)
        x = jax.random.normal(kx, (b, s, d), dtype=jnp.float32)
        wq = jax.random.uniform(kq, (d, d), jnp.float32, -bound, bound)
        wk = jax.random.uniform(kk, (d, d), jnp.float32, -bound, bound)
        wv = jax.random.uniform(kv, (d, d), jnp.float32, -bound, bound)
        return x, wq, wk, wv

    k1, k2 = jax.random.split(key)
    # Small shapes consistent with the module (hidden_dim == embedding_dim);
    # the second case (module's exact B=1, S=3, D=4) exercises the
    # sequence-padding / key-masking path.
    for (b, s, d), kcase in (((2, 8, 32), k1), ((1, 3, 4), k2)):
        x, wq, wk, wv = make_case(b, s, d, kcase)
        out = jax.block_until_ready(self_attention(x, wq, wk, wv))
        ref = self_attention_ref(x, wq, wk, wv)
        assert out.shape == (b, s, d)
        # bf16 MXU operands with f32 accumulation -> relaxed tolerance vs f32.
        assert jnp.allclose(out, ref, atol=2e-2, rtol=2e-2), (
            (b, s, d), float(jnp.max(jnp.abs(out - ref))))

    print("KERNEL_OK")
</pallas_src>

<mosaic_0001>
module attributes {stable_mosaic.version = 11 : i64} {
  func.func @self_attn_kernel(%arg0: i32, %arg1: i32, %arg2: memref<1x8x128xbf16, #tpu.memory_space<vmem>>, %arg3: memref<128x128xbf16, #tpu.memory_space<vmem>>, %arg4: memref<256x128xbf16, #tpu.memory_space<vmem>>, %arg5: memref<1x8x128xf32, #tpu.memory_space<vmem>>, %arg6: memref<8x256xbf16, #tpu.memory_space<vmem>>) attributes {dimension_semantics = [#tpu.dimension_semantics<parallel>, #tpu.dimension_semantics<arbitrary>], iteration_bounds = array<i64: 2, 1>, scalar_prefetch = 0 : i64, scratch_operands = 1 : i64, tpu.core_type = #tpu.core_type<tc>, window_params = [{transform_indices = @transform_0, window_bounds = array<i64: 1, 8, 128>}, {pipeline_mode = #tpu.pipeline_mode<synchronous>, transform_indices = @transform_1, window_bounds = array<i64: 128, 128>}, {pipeline_mode = #tpu.pipeline_mode<synchronous>, transform_indices = @transform_2, window_bounds = array<i64: 256, 128>}, {transform_indices = @transform_3, window_bounds = array<i64: 1, 8, 128>}]} {
    %c0_i32 = arith.constant 0 : i32
    %0 = arith.cmpi eq, %arg1, %c0_i32 : i32
    %1 = arith.extui %0 : i1 to i32
    %c0_i32_0 = arith.constant 0 : i32
    %2 = arith.cmpi ne, %1, %c0_i32_0 : i32
    scf.if %2 {
      %c0_14 = arith.constant 0 : index
      %c0_15 = arith.constant 0 : index
      %c0_16 = arith.constant 0 : index
      %29 = vector.load %arg2[%c0_14, %c0_15, %c0_16] : memref<1x8x128xbf16, #tpu.memory_space<vmem>>, vector<1x8x128xbf16>
      %30 = vector.shape_cast %29 : vector<1x8x128xbf16> to vector<8x128xbf16>
      %c0_17 = arith.constant 0 : index
      %c0_18 = arith.constant 0 : index
      %31 = vector.load %arg4[%c0_17, %c0_18] : memref<256x128xbf16, #tpu.memory_space<vmem>>, vector<256x128xbf16>
      %cst_19 = arith.constant dense<0.000000e+00> : vector<8x256xf32>
      %32 = tpu.matmul %30, %31, %cst_19 {dimension_numbers = #tpu.dot_dimension_numbers<[1], [1], [0], [0], [0, 0, 1, 0], [], []>} : vector<8x128xbf16>, vector<256x128xbf16>, vector<8x256xf32> -> vector<8x256xf32>
      %33 = arith.truncf %32 : vector<8x256xf32> to vector<8x256xbf16>
      %c0_20 = arith.constant 0 : index
      %c0_21 = arith.constant 0 : index
      %34 = vector.load %arg6[%c0_20, %c0_21] : memref<8x256xbf16, #tpu.memory_space<vmem>>, vector<8x256xbf16>
      tpu.vector_store %arg6[%c0_20, %c0_21], %33 {strides = array<i32>} : memref<8x256xbf16, #tpu.memory_space<vmem>>, vector<8x256xbf16>,
    } else {
    }
    %c8_i32 = arith.constant 8 : i32
    %3 = arith.muli %arg1, %c8_i32 : i32
    %4 = tpu.assume_multiple %3, 8 : i32
    %c0 = arith.constant 0 : index
    %5 = arith.index_cast %4 : i32 to index
    %c0_1 = arith.constant 0 : index
    %6 = vector.load %arg2[%c0, %5, %c0_1] : memref<1x8x128xbf16, #tpu.memory_space<vmem>>, vector<1x8x128xbf16>
    %7 = vector.shape_cast %6 : vector<1x8x128xbf16> to vector<8x128xbf16>
    %c0_2 = arith.constant 0 : index
    %c0_3 = arith.constant 0 : index
    %8 = vector.load %arg3[%c0_2, %c0_3] : memref<128x128xbf16, #tpu.memory_space<vmem>>, vector<128x128xbf16>
    %cst = arith.constant dense<0.000000e+00> : vector<8x128xf32>
    %9 = tpu.matmul %7, %8, %cst {dimension_numbers = #tpu.dot_dimension_numbers<[1], [1], [0], [0], [0, 0, 1, 0], [], []>} : vector<8x128xbf16>, vector<128x128xbf16>, vector<8x128xf32> -> vector<8x128xf32>
    %10 = arith.truncf %9 : vector<8x128xf32> to vector<8x128xbf16>
    %c0_4 = arith.constant 0 : index
    %c0_5 = arith.constant 0 : index
    %11 = vector.load %arg6[%c0_4, %c0_5] : memref<8x256xbf16, #tpu.memory_space<vmem>>, vector<8x128xbf16>
    %c0_6 = arith.constant 0 : index
    %c128 = arith.constant 128 : index
    %12 = vector.load %arg6[%c0_6, %c128] : memref<8x256xbf16, #tpu.memory_space<vmem>>, vector<8x128xbf16>
    %cst_7 = arith.constant dense<0.000000e+00> : vector<8x8xf32>
    %13 = tpu.matmul %10, %11, %cst_7 {dimension_numbers = #tpu.dot_dimension_numbers<[1], [1], [0], [0], [0, 0, 1, 0], [], []>} : vector<8x128xbf16>, vector<8x128xbf16>, vector<8x8xf32> -> vector<8x8xf32>
    %cst_8 = arith.constant dense<0xFF800000> : vector<8xf32>
    %14 = vector.multi_reduction <maximumf>, %13, %cst_8 [1] : vector<8x8xf32> to vector<8xf32>
    %15 = vector.shape_cast %14 : vector<8xf32> to vector<8x1xf32>
    %16 = vector.broadcast %15 : vector<8x1xf32> to vector<8x8xf32>
    %17 = arith.subf %13, %16 : vector<8x8xf32>
    %18 = math.exp %17 : vector<8x8xf32>
    %cst_9 = arith.constant dense<0.000000e+00> : vector<8xf32>
    %19 = vector.multi_reduction <add>, %18, %cst_9 [1] : vector<8x8xf32> to vector<8xf32>
    %20 = vector.shape_cast %19 : vector<8xf32> to vector<8x1xf32>
    %21 = arith.truncf %18 : vector<8x8xf32> to vector<8x8xbf16>
    %cst_10 = arith.constant dense<0.000000e+00> : vector<8x128xf32>
    %22 = tpu.matmul %21, %12, %cst_10 {dimension_numbers = #tpu.dot_dimension_numbers<[1], [0], [0], [1], [0, 0, 1, 1], [], []>} : vector<8x8xbf16>, vector<8x128xbf16>, vector<8x128xf32> -> vector<8x128xf32>
    %23 = tpu.reciprocal %20 {approx = true} : vector<8x1xf32> -> vector<8x1xf32>
    %24 = vector.broadcast %23 : vector<8x1xf32> to vector<8x128xf32>
    %25 = arith.mulf %22, %24 : vector<8x128xf32>
    %c0_11 = arith.constant 0 : index
    %c0_12 = arith.constant 0 : index
    %c0_13 = arith.constant 0 : index
    %26 = vector.load %arg5[%c0_11, %c0_12, %c0_13] : memref<1x8x128xf32, #tpu.memory_space<vmem>>, vector<1x8x128xf32>
    %27 = vector.shape_cast %26 : vector<1x8x128xf32> to vector<8x128xf32>
    %28 = vector.shape_cast %25 : vector<8x128xf32> to vector<1x8x128xf32>
    tpu.vector_store %arg5[%c0_11, %c0_12, %c0_13], %28 {strides = array<i32>} : memref<1x8x128xf32, #tpu.memory_space<vmem>>, vector<1x8x128xf32>,
    return
  }
  func.func @transform_0(%arg0: i32, %arg1: i32) -> (i32, i32, i32) {
    %c0_i32 = arith.constant 0 : i32
    %c0_i32_0 = arith.constant 0 : i32
    %c0_i32_1 = arith.constant 0 : i32
    return %arg0, %c0_i32, %c0_i32_0 : i32, i32, i32
  }
  func.func @transform_1(%arg0: i32, %arg1: i32) -> (i32, i32) {
    %c0_i32 = arith.constant 0 : i32
    %c0_i32_0 = arith.constant 0 : i32
    %c0_i32_1 = arith.constant 0 : i32
    return %c0_i32, %c0_i32_0 : i32, i32
  }
  func.func @transform_2(%arg0: i32, %arg1: i32) -> (i32, i32) {
    %c0_i32 = arith.constant 0 : i32
    %c0_i32_0 = arith.constant 0 : i32
    %c0_i32_1 = arith.constant 0 : i32
    return %c0_i32, %c0_i32_0 : i32, i32
  }
  func.func @transform_3(%arg0: i32, %arg1: i32) -> (i32, i32, i32) {
    %c0_i32 = arith.constant 0 : i32
    %c0_i32_0 = arith.constant 0 : i32
    return %arg0, %arg1, %c0_i32 : i32, i32, i32
  }
}

module attributes {stable_mosaic.version = 11 : i64} {
  func.func @self_attn_kernel(%arg0: i32, %arg1: i32, %arg2: memref<1x8x128xbf16, #tpu.memory_space<vmem>>, %arg3: memref<128x128xbf16, #tpu.memory_space<vmem>>, %arg4: memref<256x128xbf16, #tpu.memory_space<vmem>>, %arg5: memref<1x8x128xf32, #tpu.memory_space<vmem>>, %arg6: memref<8x256xbf16, #tpu.memory_space<vmem>>) attributes {dimension_semantics = [#tpu.dimension_semantics<parallel>, #tpu.dimension_semantics<arbitrary>], iteration_bounds = array<i64: 2, 1>, scalar_prefetch = 0 : i64, scratch_operands = 1 : i64, tpu.core_type = #tpu.core_type<tc>, window_params = [{transform_indices = @transform_0, window_bounds = array<i64: 1, 8, 128>}, {pipeline_mode = #tpu.pipeline_mode<synchronous>, transform_indices = @transform_1, window_bounds = array<i64: 128, 128>}, {pipeline_mode = #tpu.pipeline_mode<synchronous>, transform_indices = @transform_2, window_bounds = array<i64: 256, 128>}, {transform_indices = @transform_3, window_bounds = array<i64: 1, 8, 128>}]} {
    %c0_i32 = arith.constant 0 : i32
    %0 = arith.cmpi eq, %arg1, %c0_i32 : i32
    %1 = arith.extui %0 : i1 to i32
    %c0_i32_0 = arith.constant 0 : i32
    %2 = arith.cmpi ne, %1, %c0_i32_0 : i32
    scf.if %2 {
      %c0_14 = arith.constant 0 : index
      %c0_15 = arith.constant 0 : index
      %c0_16 = arith.constant 0 : index
      %29 = vector.load %arg2[%c0_14, %c0_15, %c0_16] : memref<1x8x128xbf16, #tpu.memory_space<vmem>>, vector<1x8x128xbf16>
      %30 = vector.shape_cast %29 : vector<1x8x128xbf16> to vector<8x128xbf16>
      %c0_17 = arith.constant 0 : index
      %c0_18 = arith.constant 0 : index
      %31 = vector.load %arg4[%c0_17, %c0_18] : memref<256x128xbf16, #tpu.memory_space<vmem>>, vector<256x128xbf16>
      %cst_19 = arith.constant dense<0.000000e+00> : vector<8x256xf32>
      %32 = tpu.matmul %30, %31, %cst_19 {dimension_numbers = #tpu.dot_dimension_numbers<[1], [1], [0], [0], [0, 0, 1, 0], [], []>} : vector<8x128xbf16>, vector<256x128xbf16>, vector<8x256xf32> -> vector<8x256xf32>
      %33 = arith.truncf %32 : vector<8x256xf32> to vector<8x256xbf16>
      %c0_20 = arith.constant 0 : index
      %c0_21 = arith.constant 0 : index
      %34 = vector.load %arg6[%c0_20, %c0_21] : memref<8x256xbf16, #tpu.memory_space<vmem>>, vector<8x256xbf16>
      tpu.vector_store %arg6[%c0_20, %c0_21], %33 {strides = array<i32>} : memref<8x256xbf16, #tpu.memory_space<vmem>>, vector<8x256xbf16>,
    } else {
    }
    %c8_i32 = arith.constant 8 : i32
    %3 = arith.muli %arg1, %c8_i32 : i32
    %4 = tpu.assume_multiple %3, 8 : i32
    %c0 = arith.constant 0 : index
    %5 = arith.index_cast %4 : i32 to index
    %c0_1 = arith.constant 0 : index
    %6 = vector.load %arg2[%c0, %5, %c0_1] : memref<1x8x128xbf16, #tpu.memory_space<vmem>>, vector<1x8x128xbf16>
    %7 = vector.shape_cast %6 : vector<1x8x128xbf16> to vector<8x128xbf16>
    %c0_2 = arith.constant 0 : index
    %c0_3 = arith.constant 0 : index
    %8 = vector.load %arg3[%c0_2, %c0_3] : memref<128x128xbf16, #tpu.memory_space<vmem>>, vector<128x128xbf16>
    %cst = arith.constant dense<0.000000e+00> : vector<8x128xf32>
    %9 = tpu.matmul %7, %8, %cst {dimension_numbers = #tpu.dot_dimension_numbers<[1], [1], [0], [0], [0, 0, 1, 0], [], []>} : vector<8x128xbf16>, vector<128x128xbf16>, vector<8x128xf32> -> vector<8x128xf32>
    %10 = arith.truncf %9 : vector<8x128xf32> to vector<8x128xbf16>
    %c0_4 = arith.constant 0 : index
    %c0_5 = arith.constant 0 : index
    %11 = vector.load %arg6[%c0_4, %c0_5] : memref<8x256xbf16, #tpu.memory_space<vmem>>, vector<8x128xbf16>
    %c0_6 = arith.constant 0 : index
    %c128 = arith.constant 128 : index
    %12 = vector.load %arg6[%c0_6, %c128] : memref<8x256xbf16, #tpu.memory_space<vmem>>, vector<8x128xbf16>
    %cst_7 = arith.constant dense<0.000000e+00> : vector<8x8xf32>
    %13 = tpu.matmul %10, %11, %cst_7 {dimension_numbers = #tpu.dot_dimension_numbers<[1], [1], [0], [0], [0, 0, 1, 0], [], []>} : vector<8x128xbf16>, vector<8x128xbf16>, vector<8x8xf32> -> vector<8x8xf32>
    %cst_8 = arith.constant dense<0xFF800000> : vector<8xf32>
    %14 = vector.multi_reduction <maximumf>, %13, %cst_8 [1] : vector<8x8xf32> to vector<8xf32>
    %15 = vector.shape_cast %14 : vector<8xf32> to vector<8x1xf32>
    %16 = vector.broadcast %15 : vector<8x1xf32> to vector<8x8xf32>
    %17 = arith.subf %13, %16 : vector<8x8xf32>
    %18 = math.exp %17 : vector<8x8xf32>
    %cst_9 = arith.constant dense<0.000000e+00> : vector<8xf32>
    %19 = vector.multi_reduction <add>, %18, %cst_9 [1] : vector<8x8xf32> to vector<8xf32>
    %20 = vector.shape_cast %19 : vector<8xf32> to vector<8x1xf32>
    %21 = arith.truncf %18 : vector<8x8xf32> to vector<8x8xbf16>
    %cst_10 = arith.constant dense<0.000000e+00> : vector<8x128xf32>
    %22 = tpu.matmul %21, %12, %cst_10 {dimension_numbers = #tpu.dot_dimension_numbers<[1], [0], [0], [1], [0, 0, 1, 1], [], []>} : vector<8x8xbf16>, vector<8x128xbf16>, vector<8x128xf32> -> vector<8x128xf32>
    %23 = tpu.reciprocal %20 {approx = true} : vector<8x1xf32> -> vector<8x1xf32>
    %24 = vector.broadcast %23 : vector<8x1xf32> to vector<8x128xf32>
    %25 = arith.mulf %22, %24 : vector<8x128xf32>
    %c0_11 = arith.constant 0 : index
    %c0_12 = arith.constant 0 : index
    %c0_13 = arith.constant 0 : index
    %26 = vector.load %arg5[%c0_11, %c0_12, %c0_13] : memref<1x8x128xf32, #tpu.memory_space<vmem>>, vector<1x8x128xf32>
    %27 = vector.shape_cast %26 : vector<1x8x128xf32> to vector<8x128xf32>
    %28 = vector.shape_cast %25 : vector<8x128xf32> to vector<1x8x128xf32>
    tpu.vector_store %arg5[%c0_11, %c0_12, %c0_13], %28 {strides = array<i32>} : memref<1x8x128xf32, #tpu.memory_space<vmem>>, vector<1x8x128xf32>,
    return
  }
  func.func @transform_0(%arg0: i32, %arg1: i32) -> (i32, i32, i32) {
    %c0_i32 = arith.constant 0 : i32
    %c0_i32_0 = arith.constant 0 : i32
    %c0_i32_1 = arith.constant 0 : i32
    return %arg0, %c0_i32, %c0_i32_0 : i32, i32, i32
  }
  func.func @transform_1(%arg0: i32, %arg1: i32) -> (i32, i32) {
    %c0_i32 = arith.constant 0 : i32
    %c0_i32_0 = arith.constant 0 : i32
    %c0_i32_1 = arith.constant 0 : i32
    return %c0_i32, %c0_i32_0 : i32, i32
  }
  func.func @transform_2(%arg0: i32, %arg1: i32) -> (i32, i32) {
    %c0_i32 = arith.constant 0 : i32
    %c0_i32_0 = arith.constant 0 : i32
    %c0_i32_1 = arith.constant 0 : i32
    return %c0_i32, %c0_i32_0 : i32, i32
  }
  func.func @transform_3(%arg0: i32, %arg1: i32) -> (i32, i32, i32) {
    %c0_i32 = arith.constant 0 : i32
    %c0_i32_0 = arith.constant 0 : i32
    return %arg0, %arg1, %c0_i32 : i32, i32, i32
  }
}

</mosaic_0001>

<bundles_post_ra>
// kernel: tpu_custom_call.1
= control target key start
LH: loop header
LB: loop body
LE: loop exit
PB: predicated region body
PF: predicated region fallthrough
CT: control target
= control target key end

     0   :  { %8 = vsyncpa [#allocation4], 0  ;;  %s1225_s0 = inlined_call_operand.hbm [shape: bf16[2,8,128], index: 0, kind: input, shape index: {}]   ;;  %s1226_s1 = inlined_call_operand.hbm [shape: bf16[128,128], index: 1, kind: input, shape index: {}]   ;;  %s1227_s2 = inlined_call_operand.hbm [shape: bf16[256,128], index: 2, kind: input, shape index: {}]   ;;  %s1228_s3 = inlined_call_operand.hbm [shape: f32[2,8,128], index: 3, kind: output, shape index: {}]  }
   0x1   :  { %10 = vsyncpa [#allocation4 + $0x1], 0 }
   0x2   :  { %11 = vsyncpa [#allocation7], 0 }
   0x3   :  { %12 = vsyncpa [#allocation5], 0 }
   0x4   :  { %14 = vsyncpa [#allocation5 + $0x1], 0  ;;  %s1076_s12 = smov 0   ;;  %s1078_s13 = smov 0  }
   0x5   :  { %s1080_s14 = smov 0   ;;  %s1082_s15 = smov 0  }
   0x6   :  { %s1084_s16 = smov 0   ;;  %s1086_s17 = smov 0  }
   0x7 LB: > { %s647_s18 = sadd.s32 4294967295, %s1050_s17   ;;  %p649_p0 = scmp.ge.s32.totalorder %s1050_s17, 1  ;;  %s1050_s17 = sphi %s1086_s17, %s20_s17   ;;  %s1046_s16 = sphi %s1084_s16, %s1238_s16   ;;  %s1042_s15 = sphi %s1082_s15, %s1237_s15   ;;  %s1038_s14 = sphi %s1080_s14, %s1236_s14   ;;  %s1034_s13 = sphi %s1078_s13, %s1235_s13   ;;  %s1030_s12 = sphi %s1076_s12, %s1234_s12  }
   0x8   : > { %p1110_p1 = scmp.eq.s32.totalorder %s647_s18, 0  ;;  %p133_p2 = scmp.lt.s32.totalorder %s1050_s17, 3 }
   0x9   : > { %s144_s22 = sshll.u32 %s1226_s1, 4  ;;  %s1052_s24 = smov [#allocation6]   ;;  %s145_s22 = int_to_ptr.hbm [resolvable:$true] %s144_s22 }
   0xa   : > { %p1118_p3 = pnand %p649_p0, %p133_p2  ;;  %s146_s25 = sshll.u32 %s1052_s24, 4  ;;  %s147_s25 = int_to_ptr.vmem [resolvable:$true] %s146_s25 }
   0xb   : > { %p652_p6 = scmp.ge.s32.totalorder %s1050_s17, 2  ;;  %s158_s28 = sshll.u32 %s1227_s2, 4  ;;  %s159_s28 = int_to_ptr.hbm [resolvable:$true] %s158_s28 }
   0xc   : > { %p797_p4 = pneg %p1118_p3  ;;  %s1053_s29 = smov 64  }
   0xd   : > { %s1054_s30 = smov 4   ;;  %s1055_s4 = smov [#allocation8]  }
   0xe   : > { %p798_p5 = pnand %p797_p4, %p1110_p1  ;;  %s160_s5 = sshll.u32 %s1055_s4, 4  ;;  %s161_s5 = int_to_ptr.vmem [resolvable:$true] %s160_s5 }
   0xf   : > { %s32_s6 = sadd.s32 1, %s1046_s16  ;;  %s648_s7 = sadd.s32 4294967294, %s1050_s17  }
  0x10   : > { %800 = dma.hbm_to_vmem [thread:$0]  (!%p798_p5), %s145_s22, 1024, %s147_s25, [#allocation7], %s1053_s29, %s1053_s29, %s1054_s30  }
  0x11   : > { %803 = dma.hbm_to_vmem [thread:$0]  (!%p798_p5), %s159_s28, 2048, %s161_s5, [#allocation7], %s1053_s29, %s1053_s29, %s1054_s30  }
  0x12   : > { %p34_p7 = scmp.ge.s32.totalorder %s32_s6, 2  ;;  %s39_s8 = sadd.s32 1, %s1038_s14 }
  0x13   : > { %p46_p8 = scmp.ne.s32.totalorder %s1038_s14, %s1034_s13  ;;  %p47_p9 = scmp.eq.s32.totalorder %s1050_s17, 0 }
  0x14   : > { %s1240_s6 = smov (%p34_p7, %s32_s6), 0  ;;  %p52_p10 = scmp.ne.s32.totalorder %s1034_s13, %s1030_s12 }
  0x15   : > { %s36_s9 = ssub.s32 %s1046_s16, %s1240_s6  ;;  %p120_p11 = scmp.eq.s32.totalorder %s647_s18, 1 }
  0x16   : > { %p37_p12 = scmp.eq.s32.totalorder %s36_s9, 0  ;;  %p1146_p13 = por %p1110_p1, %p52_p10 }
  0x17   : > { %p1150_p0 = por %p120_p11, %p46_p8  ;;  %p126_p2 = scmp.eq.s32.totalorder %s648_s7, 1 }
  0x18   : > { %s1155_s20 = scalar_select %p37_p12, %s1038_s14, %s39_s8  }
  0x19   : > { %p48_p4 = por %p47_p9, %p46_p8  ;;  %p1157_p5 = por %p126_p2, %p52_p10 }
  0x1a   : > { %s174_s22 = sand.u32 1, %s1038_s14   ;;  %s654_s18 = sshll.u32 %s1046_s16, 2 }
  0x1b   : > { %p814_p7 = scmp.lt.s32.totalorder %s1050_s17, 2  ;;  %s653_s24 = sshll.u32 %s174_s22, 2 }
  0x1c   : > { %s182_s27 = scalar_lea.hbm %s1225_s0, %s654_s18  ;;  %s178_s29 = scalar_lea.vmem [#allocation3], %s653_s24 }
  0x1d   : > { %s184_s28 = sshll.u32 %s182_s27, 4  ;;  %s186_s30 = sshll.u32 %s178_s29, 4  ;;  %s185_s28 = int_to_ptr.hbm [resolvable:$true] %s184_s28  ;;  %s187_s30 = int_to_ptr.vmem [resolvable:$true] %s186_s30 }
  0x1e   : > { %p805_p11 = pnand %p814_p7, %p48_p4  ;;  %s175_s4 = scalar_lea.sflag [#allocation4], %s174_s22 }
  0x1f   : > { %195 = sbr.rel (%p1118_p3) target bundleno = 649 (0x289), region = 32  ;;  %s1170_s5 = sand.u32 (!%p1118_p3), 1, %s1034_s13  }
  0x20   : > { %807 = dma.hbm_to_vmem [thread:$0]  (!%p805_p11), %s185_s28, 64, %s187_s30, %s175_s4  }
  0x21   : > { %s656_s7 = sshll.u32 (!%p1118_p3), %s1170_s5, 2  ;;  %s198_s8 = scalar_lea.sflag (!%p1118_p3), [#allocation4], %s1170_s5 }
  0x22   : > { %s1174_s9 = scalar_lea.vmem (!%p1118_p3), [#allocation3], %s656_s7 }
  0x24   : > { %1017 = dma.done.wait (%p1146_p13), %s198_s8, 64  }
  0x25   : > { %1019 = vsyncadd (%p1146_p13), %s198_s8, 4294967232 }
  0x26   : > { %1021 = dma.done.wait (%p1110_p1), [#allocation7], 3072  }
  0x27   : > { %1023 = vsyncadd (%p1110_p1), [#allocation7], 4294964224  ;;  %v768_v0 = vld [vmem:[#allocation8 + $0x38] sm:$0xff]  ;;  %v767_v3 = vld [vmem:[#allocation8 + $0x30] sm:$0xff]  ;;  %vm510_vm0 = vcmask 1043456   ;;  %vm496_vm1 = vcmask 64512  }
  0x28   : > { %v776_v1 = vld [vmem:[#allocation8 + $0x78] sm:$0xff]  ;;  %369 = vmatpush.bf16.xpose.msra.mxu0 %v768_v0  ;;  %v775_v4 = vld [vmem:[#allocation8 + $0x70] sm:$0xff]  ;;  %v766_v6 = vld [vmem:[#allocation8 + $0x28] sm:$0xff]  ;;  %s758_s19 = sshll.u32 %s1042_s15, 3  ;;  %s659_s23 = sshll.u32 %s1170_s5, 3 }
  0x29   : > { %v784_v2 = vld [vmem:[#allocation6 + $0x38] sm:$0xff]  ;;  %382 = vmatpush.bf16.xpose.msra.mxu1 %v776_v1  ;;  %v783_v5 = vld [vmem:[#allocation6 + $0x30] sm:$0xff]  ;;  %v774_v7 = vld [vmem:[#allocation8 + $0x68] sm:$0xff]  ;;  %s542_s18 = scalar_lea.hbm %s1228_s3, %s758_s19  ;;  %s234_s24 = scalar_lea.vmem [#allocation9], %s659_s23 }
  0x2a   : > { %467 = vmatpush.bf16.xpose.msra.mxu2 %v784_v2  ;;  %v782_v8 = vld [vmem:[#allocation6 + $0x28] sm:$0xff]  ;;  %v765_v9 = vld [vmem:[#allocation8 + $0x20] sm:$0xff]  ;;  %v764_v12 = vld [vmem:[#allocation8 + $0x18] sm:$0xff]  ;;  %s544_s25 = sshll.u32 %s234_s24, 4  ;;  %s546_s26 = sshll.u32 %s542_s18, 4  ;;  %s545_s25 = int_to_ptr.vmem [resolvable:$true] %s544_s25  ;;  %s547_s26 = int_to_ptr.hbm [resolvable:$true] %s546_s26 }
  0x2b   : > { %v773_v10 = vld [vmem:[#allocation8 + $0x60] sm:$0xff]  ;;  %v772_v13 = vld [vmem:[#allocation8 + $0x58] sm:$0xff]  ;;  %v763_v15 = vld [vmem:[#allocation8 + $0x10] sm:$0xff]  ;;  %s531_s27 = scalar_lea.sflag [#allocation5], %s1170_s5  ;;  %s978_s28 = sshra.s32 %s547_s26, 4  ;;  %s979_s28 = int_to_ptr.hbm [resolvable:$true] %s978_s28 }
  0x2c   : > { %v781_v11 = vld [vmem:[#allocation6 + $0x20] sm:$0xff]  ;;  %v780_v14 = vld [vmem:[#allocation6 + $0x18] sm:$0xff]  ;;  %v771_v16 = vld [vmem:[#allocation8 + $0x50] sm:$0xff]  ;;  %s980_s15 = scalar_lea.hbm %s979_s28, 8  ;;  %s984_s4 = scalar_lea.hbm %s1228_s3, 16 }
  0x2d   : > { %v779_v17 = vld [vmem:[#allocation6 + $0x10] sm:$0xff]  ;;  %v762_v18 = vld [vmem:[#allocation8 + $0x8] sm:$0xff]  ;;  %v761_v21 = vld [vmem:[#allocation8] sm:$0xff]  ;;  %p981_p1 = scmp.ne.s32.totalorder %s979_s28, %s980_s15  ;;  %p985_p9 = scmp.lt.s32.totalorder %s979_s28, %s1228_s3 }
  0x2e   : > { %v770_v19 = vld [vmem:[#allocation8 + $0x48] sm:$0xff]  ;;  %v769_v22 = vld [vmem:[#allocation8 + $0x40] sm:$0xff]  ;;  %v240_v24 = vld [vmem:[%s1174_s9] sm:$0xf]  ;;  %p986_p10 = scmp.lt.s32.totalorder %s984_s4, %s980_s15 }
  0x2f   : > { %v778_v20 = vld [vmem:[#allocation6 + $0x8] sm:$0xff]  ;;  %v777_v23 = vld [vmem:[#allocation6] sm:$0xff]  ;;  %v402_v25 = vld [vmem:[%s1174_s9] sm:$0xf]  ;;  %p982_p3 = pnand %p981_p1, %p1150_p0 }
  0x30   : > { %370 = vmatpush.bf16.xpose.msra.mxu0 %v767_v3  ;;  %p987_p12 = por %p986_p10, %p985_p9 }
  0x31   : > { %383 = vmatpush.bf16.xpose.msra.mxu1 %v775_v4  ;;  %p983_p8 = pneg %p982_p3 }
  0x32   : > { %468 = vmatpush.bf16.xpose.msra.mxu2 %v783_v5 }
  0x33   : > { %p988_p13 = pnand %p987_p12, %p983_p8 }
  0x38   : > { %371 = vmatpush.bf16.xpose.msra.mxu0 %v766_v6 }
  0x39   : > { %384 = vmatpush.bf16.xpose.msra.mxu1 %v774_v7 }
  0x3a   : > { %469 = vmatpush.bf16.xpose.msra.mxu2 %v782_v8 }
  0x40   : > { %372 = vmatpush.bf16.xpose.msra.mxu0 %v765_v9 }
  0x41   : > { %385 = vmatpush.bf16.xpose.msra.mxu1 %v773_v10 }
  0x42   : > { %470 = vmatpush.bf16.xpose.msra.mxu2 %v781_v11 }
  0x48   : > { %373 = vmatpush.bf16.xpose.msra.mxu0 %v764_v12 }
  0x49   : > { %386 = vmatpush.bf16.xpose.msra.mxu1 %v772_v13 }
  0x4a   : > { %471 = vmatpush.bf16.xpose.msra.mxu2 %v780_v14 }
  0x50   : > { %374 = vmatpush.bf16.xpose.msra.mxu0 %v763_v15 }
  0x51   : > { %387 = vmatpush.bf16.xpose.msra.mxu1 %v771_v16 }
  0x52   : > { %472 = vmatpush.bf16.xpose.msra.mxu2 %v779_v17 }
  0x58   : > { %375 = vmatpush.bf16.xpose.msra.mxu0 %v762_v18 }
  0x59   : > { %388 = vmatpush.bf16.xpose.msra.mxu1 %v770_v19 }
  0x5a   : > { %473 = vmatpush.bf16.xpose.msra.mxu2 %v778_v20 }
  0x60   : > { %376 = vmatpush.bf16.xpose.msra.mxu0 %v761_v21 }
  0x61   : > { %389 = vmatpush.bf16.xpose.msra.mxu1 %v769_v22 }
  0x62   : > { %474 = vmatpush.bf16.xpose.msra.mxu2 %v777_v23 }
  0x67   : > { %377 = vmatmul.bf16.vlgmr.msra.gmra.mxu0 %v240_v24 }
  0x68   : > { %390 = vmatmul.bf16.vlgmr.msra.gmra.mxu1 %v240_v24 }
  0x69   : > { %475 = vmatmul.bf16.vlgmr.msra.gmra.mxu2 %v402_v25 }
  0xe4   : > { %v378_v26 = vpop.f32.mrf.mxu0 }
  0xe5   : > { %v391_v27 = vpop.f32.mrf.mxu1 }
  0xe6   : > { %v395_v28 = vpack.c.bf16 %v391_v27, %v378_v26 }
  0xe8   : > { %396 = vst [vmem:[#allocation2] sm:$0xff] %v395_v28 }
  0xec   : > { %v476_v29 = vpop.f32.mrf.mxu2  ;;  %v380_v30 = vpop.f32.mrf.mxu0 }
  0xed   : > { %v393_v31 = vpop.f32.mrf.mxu1  ;;  %v480_v35 = vpack.c.bf16 %v476_v29, %v476_v29 }
  0xef   : > { %v481_v32 = vld [vmem:[#allocation2] sm:$0xf]  ;;  %v482_v33 = vld [vmem:[#allocation2 + $0x4] sm:$0xf] }
  0xf0   : > { %490 = vmatpush.bf16.xpose.msra.mxu3 %v481_v32  ;;  %v512_v34 = vsel %vm510_vm0, %v482_v33, 0 }
  0xf4   : > { %v478_v36 = vpop.f32.mrf.mxu2 }
  0xf7   : > { %491 = vmatmul.bf16.vlgmr.msra.gmra.mxu3 %v480_v35 }
  0xf8   : > { %521 = vmatpush.bf16.msrb.mxu3 %v512_v34 }
 0x17a   : > { %v492_v37 = vpop.f32.mrf.mxu3 }
 0x17b   : > { %v497_v38 = vsel %vm496_vm1, %v492_v37, -inf }
 0x17c   : > { %498 = vmax.xlane.f32.xlu0 %v497_v38 }
 0x182   : > { %v494_v39 = vpop.f32.mrf.mxu3 }
 0x1ef   : > { %v499_v40 = vpop.xlane.xlu0 %498 }
 0x1f0   : > { %v500_v41 = vsub.f32 %v492_v37, %v499_v40 }
 0x1f2   : > { %v501_v42 = vmul.f32 1.442695, %v500_v41 }
 0x1f4   : > { %870 = vpow2.f32 %v501_v42 }
 0x1fa   : > { %v871_v43 = vpop.eup %870 }
 0x1fb   : > { %v503_v44 = vsel %vm496_vm1, %v871_v43, 0.0  ;;  %v506_v45 = vpack.c.bf16 %v871_v43, %v871_v43 }
 0x1fc   : > { %504 = vadd.xlane.f32.xlu0 %v503_v44 }
 0x1fd   : > { %756 = vmatmul.msk.bf16.vlgmr.msrb.gmra.mxu3 %vm496_vm1, %v506_v45 }
 0x26f   : > { %v505_v46 = vpop.xlane.xlu0 %504 }
 0x270   : > { %872 = vrcp.f32 %v505_v46 }
 0x276   : > { %v873_v47 = vpop.eup %872 }
 0x280   : > { %v523_v48 = vpop.f32.mrf.mxu3 }
 0x281   : > { %v528_v49 = vmul.f32 %v873_v47, %v523_v48 }
 0x283   : > { %529 = vst [vmem:[%s234_s24] sm:$0xff] %v528_v49 }
 0x284   : > { %991 = shalt.err (!%p988_p13)
}
 0x285   : > { %795 = dma.vmem_to_hbm [thread:$0]  (%p1150_p0), %s545_s25, 128, %s547_s26, %s531_s27  }
 0x288   : > { %v525_v50 = vpop.f32.mrf.mxu3 }
 0x289 PF: > { %s558_s5 = sand.u32 1, %s1030_s12   ;;  %p809_p2 = pnand %p652_p6, %p1157_p5 }
 0x28a   : > { %s559_s9 = scalar_lea.sflag [#allocation5], %s558_s5 }
 0x28b   : > { %p810_p4 = pneg %p809_p2 }
 0x28d   : > { %1025 = dma.done.wait (%p810_p4), %s559_s9, 128  }
 0x28e   : > { %1027 = vsyncadd (%p810_p4), %s559_s9, 4294967168  ;;  %s20_s17 = sadd.s32 1, %s1050_s17   ;;  %s1234_s12 = smov %s1034_s13 }
 0x28f   : > { %p17_p7 = scmp.ge.s32.totalorder %s20_s17, 4   ;;  %s1235_s13 = smov %s1038_s14 }
 0x290   : > { %s1236_s14 = smov %s1155_s20  ;;  %s1237_s15 = smov %s1046_s16 }
 0x291   : > { %s1238_s16 = smov %s1240_s6  ;;  %19 = sbr.rel (!%p17_p7) target bundleno = 7 (0x7), region = 90 }
 0x296   :  { %565 = vsyncpa [#allocation4], 1 }
 0x297   :  { %567 = vsyncpa [#allocation4 + $0x1], 1 }
 0x298   :  { %568 = vsyncpa [#allocation7], 1 }
 0x299   :  { %569 = vsyncpa [#allocation5], 1 }
 0x29a   :  { %571 = vsyncpa [#allocation5 + $0x1], 1 }

// kernel: tpu_custom_call.1
= control target key start
LH: loop header
LB: loop body
LE: loop exit
PB: predicated region body
PF: predicated region fallthrough
CT: control target
= control target key end

     0   :  { %8 = vsyncpa [#allocation4], 0  ;;  %s1225_s0 = inlined_call_operand.hbm [shape: bf16[2,8,128], index: 0, kind: input, shape index: {}]   ;;  %s1226_s1 = inlined_call_operand.hbm [shape: bf16[128,128], index: 1, kind: input, shape index: {}]   ;;  %s1227_s2 = inlined_call_operand.hbm [shape: bf16[256,128], index: 2, kind: input, shape index: {}]   ;;  %s1228_s3 = inlined_call_operand.hbm [shape: f32[2,8,128], index: 3, kind: output, shape index: {}]  }
   0x1   :  { %10 = vsyncpa [#allocation4 + $0x1], 0 }
   0x2   :  { %11 = vsyncpa [#allocation7], 0 }
   0x3   :  { %12 = vsyncpa [#allocation5], 0 }
   0x4   :  { %14 = vsyncpa [#allocation5 + $0x1], 0  ;;  %s1076_s12 = smov 0   ;;  %s1078_s13 = smov 0  }
   0x5   :  { %s1080_s14 = smov 0   ;;  %s1082_s15 = smov 0  }
   0x6   :  { %s1084_s16 = smov 0   ;;  %s1086_s17 = smov 0  }
   0x7 LB: > { %s647_s18 = sadd.s32 4294967295, %s1050_s17   ;;  %p649_p0 = scmp.ge.s32.totalorder %s1050_s17, 1  ;;  %s1050_s17 = sphi %s1086_s17, %s20_s17   ;;  %s1046_s16 = sphi %s1084_s16, %s1238_s16   ;;  %s1042_s15 = sphi %s1082_s15, %s1237_s15   ;;  %s1038_s14 = sphi %s1080_s14, %s1236_s14   ;;  %s1034_s13 = sphi %s1078_s13, %s1235_s13   ;;  %s1030_s12 = sphi %s1076_s12, %s1234_s12  }
   0x8   : > { %p1110_p1 = scmp.eq.s32.totalorder %s647_s18, 0  ;;  %p133_p2 = scmp.lt.s32.totalorder %s1050_s17, 3 }
   0x9   : > { %s144_s22 = sshll.u32 %s1226_s1, 4  ;;  %s1052_s24 = smov [#allocation6]   ;;  %s145_s22 = int_to_ptr.hbm [resolvable:$true] %s144_s22 }
   0xa   : > { %p1118_p3 = pnand %p649_p0, %p133_p2  ;;  %s146_s25 = sshll.u32 %s1052_s24, 4  ;;  %s147_s25 = int_to_ptr.vmem [resolvable:$true] %s146_s25 }
   0xb   : > { %p652_p6 = scmp.ge.s32.totalorder %s1050_s17, 2  ;;  %s158_s28 = sshll.u32 %s1227_s2, 4  ;;  %s159_s28 = int_to_ptr.hbm [resolvable:$true] %s158_s28 }
   0xc   : > { %p797_p4 = pneg %p1118_p3  ;;  %s1053_s29 = smov 64  }
   0xd   : > { %s1054_s30 = smov 4   ;;  %s1055_s4 = smov [#allocation8]  }
   0xe   : > { %p798_p5 = pnand %p797_p4, %p1110_p1  ;;  %s160_s5 = sshll.u32 %s1055_s4, 4  ;;  %s161_s5 = int_to_ptr.vmem [resolvable:$true] %s160_s5 }
   0xf   : > { %s32_s6 = sadd.s32 1, %s1046_s16  ;;  %s648_s7 = sadd.s32 4294967294, %s1050_s17  }
  0x10   : > { %800 = dma.hbm_to_vmem [thread:$0]  (!%p798_p5), %s145_s22, 1024, %s147_s25, [#allocation7], %s1053_s29, %s1053_s29, %s1054_s30  }
  0x11   : > { %803 = dma.hbm_to_vmem [thread:$0]  (!%p798_p5), %s159_s28, 2048, %s161_s5, [#allocation7], %s1053_s29, %s1053_s29, %s1054_s30  }
  0x12   : > { %p34_p7 = scmp.ge.s32.totalorder %s32_s6, 2  ;;  %s39_s8 = sadd.s32 1, %s1038_s14 }
  0x13   : > { %p46_p8 = scmp.ne.s32.totalorder %s1038_s14, %s1034_s13  ;;  %p47_p9 = scmp.eq.s32.totalorder %s1050_s17, 0 }
  0x14   : > { %s1240_s6 = smov (%p34_p7, %s32_s6), 0  ;;  %p52_p10 = scmp.ne.s32.totalorder %s1034_s13, %s1030_s12 }
  0x15   : > { %s36_s9 = ssub.s32 %s1046_s16, %s1240_s6  ;;  %p120_p11 = scmp.eq.s32.totalorder %s647_s18, 1 }
  0x16   : > { %p37_p12 = scmp.eq.s32.totalorder %s36_s9, 0  ;;  %p1146_p13 = por %p1110_p1, %p52_p10 }
  0x17   : > { %p1150_p0 = por %p120_p11, %p46_p8  ;;  %p126_p2 = scmp.eq.s32.totalorder %s648_s7, 1 }
  0x18   : > { %s1155_s20 = scalar_select %p37_p12, %s1038_s14, %s39_s8  }
  0x19   : > { %p48_p4 = por %p47_p9, %p46_p8  ;;  %p1157_p5 = por %p126_p2, %p52_p10 }
  0x1a   : > { %s174_s22 = sand.u32 1, %s1038_s14   ;;  %s654_s18 = sshll.u32 %s1046_s16, 2 }
  0x1b   : > { %p814_p7 = scmp.lt.s32.totalorder %s1050_s17, 2  ;;  %s653_s24 = sshll.u32 %s174_s22, 2 }
  0x1c   : > { %s182_s27 = scalar_lea.hbm %s1225_s0, %s654_s18  ;;  %s178_s29 = scalar_lea.vmem [#allocation3], %s653_s24 }
  0x1d   : > { %s184_s28 = sshll.u32 %s182_s27, 4  ;;  %s186_s30 = sshll.u32 %s178_s29, 4  ;;  %s185_s28 = int_to_ptr.hbm [resolvable:$true] %s184_s28  ;;  %s187_s30 = int_to_ptr.vmem [resolvable:$true] %s186_s30 }
  0x1e   : > { %p805_p11 = pnand %p814_p7, %p48_p4  ;;  %s175_s4 = scalar_lea.sflag [#allocation4], %s174_s22 }
  0x1f   : > { %195 = sbr.rel (%p1118_p3) target bundleno = 649 (0x289), region = 32  ;;  %s1170_s5 = sand.u32 (!%p1118_p3), 1, %s1034_s13  }
  0x20   : > { %807 = dma.hbm_to_vmem [thread:$0]  (!%p805_p11), %s185_s28, 64, %s187_s30, %s175_s4  }
  0x21   : > { %s656_s7 = sshll.u32 (!%p1118_p3), %s1170_s5, 2  ;;  %s198_s8 = scalar_lea.sflag (!%p1118_p3), [#allocation4], %s1170_s5 }
  0x22   : > { %s1174_s9 = scalar_lea.vmem (!%p1118_p3), [#allocation3], %s656_s7 }
  0x24   : > { %1017 = dma.done.wait (%p1146_p13), %s198_s8, 64  }
  0x25   : > { %1019 = vsyncadd (%p1146_p13), %s198_s8, 4294967232 }
  0x26   : > { %1021 = dma.done.wait (%p1110_p1), [#allocation7], 3072  }
  0x27   : > { %1023 = vsyncadd (%p1110_p1), [#allocation7], 4294964224  ;;  %v768_v0 = vld [vmem:[#allocation8 + $0x38] sm:$0xff]  ;;  %v767_v3 = vld [vmem:[#allocation8 + $0x30] sm:$0xff]  ;;  %vm510_vm0 = vcmask 1043456   ;;  %vm496_vm1 = vcmask 64512  }
  0x28   : > { %v776_v1 = vld [vmem:[#allocation8 + $0x78] sm:$0xff]  ;;  %369 = vmatpush.bf16.xpose.msra.mxu0 %v768_v0  ;;  %v775_v4 = vld [vmem:[#allocation8 + $0x70] sm:$0xff]  ;;  %v766_v6 = vld [vmem:[#allocation8 + $0x28] sm:$0xff]  ;;  %s758_s19 = sshll.u32 %s1042_s15, 3  ;;  %s659_s23 = sshll.u32 %s1170_s5, 3 }
  0x29   : > { %v784_v2 = vld [vmem:[#allocation6 + $0x38] sm:$0xff]  ;;  %382 = vmatpush.bf16.xpose.msra.mxu1 %v776_v1  ;;  %v783_v5 = vld [vmem:[#allocation6 + $0x30] sm:$0xff]  ;;  %v774_v7 = vld [vmem:[#allocation8 + $0x68] sm:$0xff]  ;;  %s542_s18 = scalar_lea.hbm %s1228_s3, %s758_s19  ;;  %s234_s24 = scalar_lea.vmem [#allocation9], %s659_s23 }
  0x2a   : > { %467 = vmatpush.bf16.xpose.msra.mxu2 %v784_v2  ;;  %v782_v8 = vld [vmem:[#allocation6 + $0x28] sm:$0xff]  ;;  %v765_v9 = vld [vmem:[#allocation8 + $0x20] sm:$0xff]  ;;  %v764_v12 = vld [vmem:[#allocation8 + $0x18] sm:$0xff]  ;;  %s544_s25 = sshll.u32 %s234_s24, 4  ;;  %s546_s26 = sshll.u32 %s542_s18, 4  ;;  %s545_s25 = int_to_ptr.vmem [resolvable:$true] %s544_s25  ;;  %s547_s26 = int_to_ptr.hbm [resolvable:$true] %s546_s26 }
  0x2b   : > { %v773_v10 = vld [vmem:[#allocation8 + $0x60] sm:$0xff]  ;;  %v772_v13 = vld [vmem:[#allocation8 + $0x58] sm:$0xff]  ;;  %v763_v15 = vld [vmem:[#allocation8 + $0x10] sm:$0xff]  ;;  %s531_s27 = scalar_lea.sflag [#allocation5], %s1170_s5  ;;  %s978_s28 = sshra.s32 %s547_s26, 4  ;;  %s979_s28 = int_to_ptr.hbm [resolvable:$true] %s978_s28 }
  0x2c   : > { %v781_v11 = vld [vmem:[#allocation6 + $0x20] sm:$0xff]  ;;  %v780_v14 = vld [vmem:[#allocation6 + $0x18] sm:$0xff]  ;;  %v771_v16 = vld [vmem:[#allocation8 + $0x50] sm:$0xff]  ;;  %s980_s15 = scalar_lea.hbm %s979_s28, 8  ;;  %s984_s4 = scalar_lea.hbm %s1228_s3, 16 }
  0x2d   : > { %v779_v17 = vld [vmem:[#allocation6 + $0x10] sm:$0xff]  ;;  %v762_v18 = vld [vmem:[#allocation8 + $0x8] sm:$0xff]  ;;  %v761_v21 = vld [vmem:[#allocation8] sm:$0xff]  ;;  %p981_p1 = scmp.ne.s32.totalorder %s979_s28, %s980_s15  ;;  %p985_p9 = scmp.lt.s32.totalorder %s979_s28, %s1228_s3 }
  0x2e   : > { %v770_v19 = vld [vmem:[#allocation8 + $0x48] sm:$0xff]  ;;  %v769_v22 = vld [vmem:[#allocation8 + $0x40] sm:$0xff]  ;;  %v240_v24 = vld [vmem:[%s1174_s9] sm:$0xf]  ;;  %p986_p10 = scmp.lt.s32.totalorder %s984_s4, %s980_s15 }
  0x2f   : > { %v778_v20 = vld [vmem:[#allocation6 + $0x8] sm:$0xff]  ;;  %v777_v23 = vld [vmem:[#allocation6] sm:$0xff]  ;;  %v402_v25 = vld [vmem:[%s1174_s9] sm:$0xf]  ;;  %p982_p3 = pnand %p981_p1, %p1150_p0 }
  0x30   : > { %370 = vmatpush.bf16.xpose.msra.mxu0 %v767_v3  ;;  %p987_p12 = por %p986_p10, %p985_p9 }
  0x31   : > { %383 = vmatpush.bf16.xpose.msra.mxu1 %v775_v4  ;;  %p983_p8 = pneg %p982_p3 }
  0x32   : > { %468 = vmatpush.bf16.xpose.msra.mxu2 %v783_v5 }
  0x33   : > { %p988_p13 = pnand %p987_p12, %p983_p8 }
  0x38   : > { %371 = vmatpush.bf16.xpose.msra.mxu0 %v766_v6 }
  0x39   : > { %384 = vmatpush.bf16.xpose.msra.mxu1 %v774_v7 }
  0x3a   : > { %469 = vmatpush.bf16.xpose.msra.mxu2 %v782_v8 }
  0x40   : > { %372 = vmatpush.bf16.xpose.msra.mxu0 %v765_v9 }
  0x41   : > { %385 = vmatpush.bf16.xpose.msra.mxu1 %v773_v10 }
  0x42   : > { %470 = vmatpush.bf16.xpose.msra.mxu2 %v781_v11 }
  0x48   : > { %373 = vmatpush.bf16.xpose.msra.mxu0 %v764_v12 }
  0x49   : > { %386 = vmatpush.bf16.xpose.msra.mxu1 %v772_v13 }
  0x4a   : > { %471 = vmatpush.bf16.xpose.msra.mxu2 %v780_v14 }
  0x50   : > { %374 = vmatpush.bf16.xpose.msra.mxu0 %v763_v15 }
  0x51   : > { %387 = vmatpush.bf16.xpose.msra.mxu1 %v771_v16 }
  0x52   : > { %472 = vmatpush.bf16.xpose.msra.mxu2 %v779_v17 }
  0x58   : > { %375 = vmatpush.bf16.xpose.msra.mxu0 %v762_v18 }
  0x59   : > { %388 = vmatpush.bf16.xpose.msra.mxu1 %v770_v19 }
  0x5a   : > { %473 = vmatpush.bf16.xpose.msra.mxu2 %v778_v20 }
  0x60   : > { %376 = vmatpush.bf16.xpose.msra.mxu0 %v761_v21 }
  0x61   : > { %389 = vmatpush.bf16.xpose.msra.mxu1 %v769_v22 }
  0x62   : > { %474 = vmatpush.bf16.xpose.msra.mxu2 %v777_v23 }
  0x67   : > { %377 = vmatmul.bf16.vlgmr.msra.gmra.mxu0 %v240_v24 }
  0x68   : > { %390 = vmatmul.bf16.vlgmr.msra.gmra.mxu1 %v240_v24 }
  0x69   : > { %475 = vmatmul.bf16.vlgmr.msra.gmra.mxu2 %v402_v25 }
  0xe4   : > { %v378_v26 = vpop.f32.mrf.mxu0 }
  0xe5   : > { %v391_v27 = vpop.f32.mrf.mxu1 }
  0xe6   : > { %v395_v28 = vpack.c.bf16 %v391_v27, %v378_v26 }
  0xe8   : > { %396 = vst [vmem:[#allocation2] sm:$0xff] %v395_v28 }
  0xec   : > { %v476_v29 = vpop.f32.mrf.mxu2  ;;  %v380_v30 = vpop.f32.mrf.mxu0 }
  0xed   : > { %v393_v31 = vpop.f32.mrf.mxu1  ;;  %v480_v35 = vpack.c.bf16 %v476_v29, %v476_v29 }
  0xef   : > { %v481_v32 = vld [vmem:[#allocation2] sm:$0xf]  ;;  %v482_v33 = vld [vmem:[#allocation2 + $0x4] sm:$0xf] }
  0xf0   : > { %490 = vmatpush.bf16.xpose.msra.mxu3 %v481_v32  ;;  %v512_v34 = vsel %vm510_vm0, %v482_v33, 0 }
  0xf4   : > { %v478_v36 = vpop.f32.mrf.mxu2 }
  0xf7   : > { %491 = vmatmul.bf16.vlgmr.msra.gmra.mxu3 %v480_v35 }
  0xf8   : > { %521 = vmatpush.bf16.msrb.mxu3 %v512_v34 }
 0x17a   : > { %v492_v37 = vpop.f32.mrf.mxu3 }
 0x17b   : > { %v497_v38 = vsel %vm496_vm1, %v492_v37, -inf }
 0x17c   : > { %498 = vmax.xlane.f32.xlu0 %v497_v38 }
 0x182   : > { %v494_v39 = vpop.f32.mrf.mxu3 }
 0x1ef   : > { %v499_v40 = vpop.xlane.xlu0 %498 }
 0x1f0   : > { %v500_v41 = vsub.f32 %v492_v37, %v499_v40 }
 0x1f2   : > { %v501_v42 = vmul.f32 1.442695, %v500_v41 }
 0x1f4   : > { %870 = vpow2.f32 %v501_v42 }
 0x1fa   : > { %v871_v43 = vpop.eup %870 }
 0x1fb   : > { %v503_v44 = vsel %vm496_vm1, %v871_v43, 0.0  ;;  %v506_v45 = vpack.c.bf16 %v871_v43, %v871_v43 }
 0x1fc   : > { %504 = vadd.xlane.f32.xlu0 %v503_v44 }
 0x1fd   : > { %756 = vmatmul.msk.bf16.vlgmr.msrb.gmra.mxu3 %vm496_vm1, %v506_v45 }
 0x26f   : > { %v505_v46 = vpop.xlane.xlu0 %504 }
 0x270   : > { %872 = vrcp.f32 %v505_v46 }
 0x276   : > { %v873_v47 = vpop.eup %872 }
 0x280   : > { %v523_v48 = vpop.f32.mrf.mxu3 }
 0x281   : > { %v528_v49 = vmul.f32 %v873_v47, %v523_v48 }
 0x283   : > { %529 = vst [vmem:[%s234_s24] sm:$0xff] %v528_v49 }
 0x284   : > { %991 = shalt.err (!%p988_p13)
}
 0x285   : > { %795 = dma.vmem_to_hbm [thread:$0]  (%p1150_p0), %s545_s25, 128, %s547_s26, %s531_s27  }
 0x288   : > { %v525_v50 = vpop.f32.mrf.mxu3 }
 0x289 PF: > { %s558_s5 = sand.u32 1, %s1030_s12   ;;  %p809_p2 = pnand %p652_p6, %p1157_p5 }
 0x28a   : > { %s559_s9 = scalar_lea.sflag [#allocation5], %s558_s5 }
 0x28b   : > { %p810_p4 = pneg %p809_p2 }
 0x28d   : > { %1025 = dma.done.wait (%p810_p4), %s559_s9, 128  }
 0x28e   : > { %1027 = vsyncadd (%p810_p4), %s559_s9, 4294967168  ;;  %s20_s17 = sadd.s32 1, %s1050_s17   ;;  %s1234_s12 = smov %s1034_s13 }
 0x28f   : > { %p17_p7 = scmp.ge.s32.totalorder %s20_s17, 4   ;;  %s1235_s13 = smov %s1038_s14 }
 0x290   : > { %s1236_s14 = smov %s1155_s20  ;;  %s1237_s15 = smov %s1046_s16 }
 0x291   : > { %s1238_s16 = smov %s1240_s6  ;;  %19 = sbr.rel (!%p17_p7) target bundleno = 7 (0x7), region = 90 }
 0x296   :  { %565 = vsyncpa [#allocation4], 1 }
 0x297   :  { %567 = vsyncpa [#allocation4 + $0x1], 1 }
 0x298   :  { %568 = vsyncpa [#allocation7], 1 }
 0x299   :  { %569 = vsyncpa [#allocation5], 1 }
 0x29a   :  { %571 = vsyncpa [#allocation5 + $0x1], 1 }

</bundles_post_ra>
